<compile_context>
chip_gen: v5e
topology: v5e:2x2
jax: 0.10.0
libtpu: 0.0.40
codegen_flags: <defaults>
</compile_context>

<pallas_src>
import math

import jax
import jax.numpy as jnp
from jax.experimental import pallas as pl
from jax.experimental.pallas import tpu as pltpu

_INV_SQRT2 = 1.0 / math.sqrt(2.0)
_LN_EPS = 1e-5


# --------------------------------------------------------------------------- #
# Hardware-aware tiling helpers
# --------------------------------------------------------------------------- #
def _tpu_topology():
    """Return (vmem_capacity_bytes, is_two_tensorcore_chip) with safe fallbacks."""
    vmem_cap = None
    try:
        vmem_cap = int(pltpu.get_tpu_info().vmem_capacity_bytes)
    except Exception:
        vmem_cap = None
    kind = ""
    try:
        kind = jax.devices()[0].device_kind.lower()
    except Exception:
        kind = ""
    two_tc = ("v7" in kind) or ("7x" in kind)
    if vmem_cap is None:
        vmem_cap = (64 << 20) if two_tc else (128 << 20)
    return vmem_cap, two_tc


def _choose_block_b(batch, hp, in_itemsize, out_itemsize, requested, budget_bytes):
    """Largest sublane-aligned batch tile whose buffers fit the VMEM budget.

    Per-row cost: 2x double-buffered input + 2x double-buffered output
    + ~4 live f32 temporaries (x_f32 / conv / gelu / normed).
    """
    per_row = hp * (2 * in_itemsize + 2 * out_itemsize + 4 * 4)
    max_rows = max(8, budget_bytes // per_row)
    bb = min(int(requested), int(batch), int(max_rows))
    if bb >= 8:
        bb = (bb // 8) * 8
    return max(1, bb)


def _even_grid_block_b(batch, block_b):
    """On 2-TC chips prefer an even number of grid steps for balanced sharding."""
    steps = -(-batch // block_b)
    if steps <= 1 or steps % 2 == 0:
        return block_b
    bb = -(-batch // (steps + 1))
    if bb >= 8:
        bb = (-(-bb // 8)) * 8
    bb = max(1, bb)
    return bb if (-(-batch // bb)) % 2 == 0 else block_b


# --------------------------------------------------------------------------- #
# Kernel bodies
# --------------------------------------------------------------------------- #
def _gelu_layernorm(conv, gamma, beta, inv_h, approximate_gelu):
    """GELU + LayerNorm(eps=1e-5) over the lane axis (real length = 1/inv_h)."""
    if approximate_gelu:
        # tanh-based GELU runs on the otherwise idle EUP slot (~1e-3 off erf).
        g = jax.nn.gelu(conv, approximate=True)
    else:
        # Exact erf GELU — matches torch.nn.GELU() default.
        g = 0.5 * conv * (1.0 + jax.lax.erf(conv * _INV_SQRT2))
    # Single-pass variance; padded lanes contribute exactly zero, so dividing
    # by the real H keeps the statistics correct.
    mean = jnp.sum(g, axis=-1, keepdims=True) * inv_h
    mean_sq = jnp.sum(g * g, axis=-1, keepdims=True) * inv_h
    var = jnp.maximum(mean_sq - mean * mean, 0.0)
    normed = (g - mean) * jax.lax.rsqrt(var + _LN_EPS)
    return normed * gamma + beta


def _make_roll_kernel(hp, inv_h, approximate_gelu):
    """3-tap conv via XLU rolls with host-prebuilt, boundary-masked weight rows."""

    def kernel(x_ref, p_ref, o_ref):
        x = x_ref[...].astype(jnp.float32)          # (TB, Hp)
        p = p_ref[...]                              # (6, Hp) f32
        w_c, w_l, w_r = p[0:1, :], p[1:2, :], p[2:3, :]
        b, gamma, beta = p[3:4, :], p[4:5, :], p[5:6, :]
        conv = (x * w_c
                + pltpu.roll(x, shift=1, axis=1) * w_l          # x[:, j-1]*w[j-1]
                + pltpu.roll(x, shift=hp - 1, axis=1) * w_r     # x[:, j+1]*w[j+1]
                + b)
        out = _gelu_layernorm(conv, gamma, beta, inv_h, approximate_gelu)
        o_ref[...] = out.astype(o_ref.dtype)

    return kernel


def _make_mxu_kernel(inv_h, approximate_gelu):
    """Weight-scale + 3-tap conv fused into one MXU matmul against a banded M."""

    def kernel(x_ref, m_ref, p_ref, o_ref):
        x = x_ref[...].astype(jnp.float32)          # (TB, Hp)
        m = m_ref[...]                              # (Hp, Hp) f32 banded matrix
        p = p_ref[...]                              # (3, Hp): bias, gamma, beta
        b, gamma, beta = p[0:1, :], p[1:2, :], p[2:3, :]
        conv = jnp.dot(x, m,
                       preferred_element_type=jnp.float32,
                       precision=jax.lax.Precision.HIGHEST) + b
        out = _gelu_layernorm(conv, gamma, beta, inv_h, approximate_gelu)
        o_ref[...] = out.astype(o_ref.dtype)

    return kernel


# --------------------------------------------------------------------------- #
# Wrapper
# --------------------------------------------------------------------------- #
def grid_block(x, weight, bias, gamma, beta, *, block_b=8192,
               approximate_gelu=False, use_mxu_conv=None):
    """Forward pass of GridBlock: LayerNorm(GELU(GridLayer(x))); dropout = eval."""
    B, H = x.shape
    out_dtype = x.dtype
    f32 = jnp.float32

    # Lane-dense layout: pad grid_height to a multiple of 128.
    Hp = ((max(H, 1) + 127) // 128) * 128
    pad = Hp - H

    if use_mxu_conv is None:
        use_mxu_conv = Hp <= 512   # band sparsity wastes MXU FLOPs for large H

    w = weight.reshape(H).astype(f32)
    b_v = bias.reshape(H).astype(f32)
    g_v = gamma.reshape(H).astype(f32)
    bt_v = beta.reshape(H).astype(f32)

    def _pad1(v):
        return jnp.pad(v, (0, pad)) if pad else v

    x_p = jnp.pad(x, ((0, 0), (0, pad))) if pad else x

    # Generation-aware tile sizing.
    vmem_cap, two_tc = _tpu_topology()
    budget = (24 << 20) if vmem_cap <= (64 << 20) else (48 << 20)
    in_isz = x.dtype.itemsize
    out_isz = in_isz
    block_b = _choose_block_b(B, Hp, in_isz, out_isz, block_b, budget)
    if two_tc:
        block_b = _even_grid_block_b(B, block_b)
    steps = pl.cdiv(B, block_b)

    inv_h = 1.0 / float(H)

    if use_mxu_conv:
        # Banded matrix: M[i, j] = w[i] for |i-j| <= 1 inside the real H window.
        ii = jnp.arange(Hp)[:, None]
        jj = jnp.arange(Hp)[None, :]
        band = (jnp.abs(ii - jj) <= 1) & (ii < H) & (jj < H)
        m_mat = jnp.where(band, _pad1(w)[:, None], 0.0).astype(f32)
        params = jnp.stack([_pad1(b_v), _pad1(g_v), _pad1(bt_v)], axis=0)  # (3, Hp)
        kernel = _make_mxu_kernel(inv_h, approximate_gelu)
        in_specs = [
            pl.BlockSpec((block_b, Hp), lambda i: (i, 0)),
            pl.BlockSpec((Hp, Hp), lambda i: (0, 0)),
            pl.BlockSpec((params.shape[0], Hp), lambda i: (0, 0)),
        ]
        inputs = (x_p, m_mat, params)
        m_bytes = Hp * Hp * 4
    else:
        # Pre-rolled, boundary-masked weight rows (no iota / mask work in-kernel).
        w_left = jnp.concatenate([jnp.zeros((1,), f32), w[:-1]])   # w[j-1], 0 at j=0
        w_right = jnp.concatenate([w[1:], jnp.zeros((1,), f32)])   # w[j+1], 0 at j=H-1
        params = jnp.stack([_pad1(w), _pad1(w_left), _pad1(w_right),
                            _pad1(b_v), _pad1(g_v), _pad1(bt_v)], axis=0)  # (6, Hp)
        kernel = _make_roll_kernel(Hp, inv_h, approximate_gelu)
        in_specs = [
            pl.BlockSpec((block_b, Hp), lambda i: (i, 0)),
            pl.BlockSpec((params.shape[0], Hp), lambda i: (0, 0)),
        ]
        inputs = (x_p, params)
        m_bytes = 0

    # VMEM limit from actual buffer math (double buffers + f32 temps + slack).
    params_bytes = params.size * 4
    in_tile = block_b * Hp * in_isz
    out_tile = block_b * Hp * out_isz
    temps = 4 * block_b * Hp * 4
    need = 2 * in_tile + 2 * out_tile + temps + 2 * params_bytes + 2 * m_bytes + (4 << 20)
    cap_limit = (96 << 20) if vmem_cap > (64 << 20) else (48 << 20)
    vmem_limit = int(min(max(need, 32 << 20), cap_limit))

    flops = B * Hp * ((2 * Hp + 20) if use_mxu_conv else 30)
    cost = pl.CostEstimate(
        flops=int(flops),
        transcendentals=int(B * Hp),
        bytes_accessed=int(B * H * (in_isz + out_isz) + params_bytes + m_bytes),
    )

    out_p = pl.pallas_call(
        kernel,
        out_shape=jax.ShapeDtypeStruct((B, Hp), out_dtype),
        grid_spec=pltpu.PrefetchScalarGridSpec(
            num_scalar_prefetch=0,
            grid=(steps,),
            in_specs=in_specs,
            out_specs=pl.BlockSpec((block_b, Hp), lambda i: (i, 0)),
        ),
        compiler_params=pltpu.CompilerParams(
            dimension_semantics=("parallel",),
            vmem_limit_bytes=vmem_limit,
        ),
        cost_estimate=cost,
    )(*inputs)

    return out_p[:, :H] if pad else out_p


# --------------------------------------------------------------------------- #
# Pure-JAX reference (two-pass LayerNorm, exact erf GELU) and param init
# --------------------------------------------------------------------------- #
def grid_block_ref(x, weight, bias, gamma, beta):
    y = x.astype(jnp.float32) * weight.reshape(1, -1)
    y_left = jnp.pad(y, ((0, 0), (1, 0)))[:, :-1]
    y_right = jnp.pad(y, ((0, 0), (0, 1)))[:, 1:]
    conv = y_left + y + y_right + bias.reshape(1, -1)
    g = 0.5 * conv * (1.0 + jax.lax.erf(conv * _INV_SQRT2))
    mean = jnp.mean(g, axis=-1, keepdims=True)
    var = jnp.mean((g - mean) ** 2, axis=-1, keepdims=True)
    normed = (g - mean) / jnp.sqrt(var + _LN_EPS)
    return (normed * gamma.reshape(1, -1) + beta.reshape(1, -1)).astype(x.dtype)


def init_params(key, grid_height):
    """Deterministic param init matching the shapes / schemes of __init__."""
    kw, kb = jax.random.split(key)
    bound = math.sqrt(6.0 / (grid_height + 1.0))   # xavier_uniform_ for (1, H)
    weight = jax.random.uniform(kw, (1, grid_height), jnp.float32, -bound, bound)
    bias = jax.random.uniform(kb, (1, grid_height), jnp.float32, -bound, bound)
    gamma = jnp.ones((1, grid_height), jnp.float32)   # nn.LayerNorm affine init
    beta = jnp.zeros((1, grid_height), jnp.float32)
    return weight, bias, gamma, beta


if __name__ == "__main__":
    key = jax.random.PRNGKey(0)

    # Case 1: H = 128 (the stated use case) -> MXU banded-conv path.
    batch, grid_height = 16, 128
    kx, kp, key = jax.random.split(key, 3)
    x = jax.random.normal(kx, (batch, grid_height), jnp.float32)
    weight, bias, gamma, beta = init_params(kp, grid_height)
    out = grid_block(x, weight, bias, gamma, beta)
    jax.block_until_ready(out)
    ref = grid_block_ref(x, weight, bias, gamma, beta)
    assert out.shape == (batch, grid_height)
    assert float(jnp.max(jnp.abs(out - ref))) < 5e-3, "MXU conv path mismatch"

    # Case 2: H = 96 (not a lane multiple) -> zero-padded roll path.
    batch2, grid_height2 = 16, 96
    kx2, kp2, key = jax.random.split(key, 3)
    x2 = jax.random.normal(kx2, (batch2, grid_height2), jnp.float32)
    w2, b2, g2, bt2 = init_params(kp2, grid_height2)
    out2 = grid_block(x2, w2, b2, g2, bt2, use_mxu_conv=False)
    jax.block_until_ready(out2)
    ref2 = grid_block_ref(x2, w2, b2, g2, bt2)
    assert out2.shape == (batch2, grid_height2)
    assert float(jnp.max(jnp.abs(out2 - ref2))) < 1e-4, "roll conv path mismatch"

    print("KERNEL_OK")
</pallas_src>

<mosaic_0001>
module attributes {stable_mosaic.version = 11 : i64} {
  func.func @kernel(%arg0: i32, %arg1: memref<16x128xf32, #tpu.memory_space<vmem>>, %arg2: memref<128x128xf32, #tpu.memory_space<vmem>>, %arg3: memref<3x128xf32, #tpu.memory_space<vmem>>, %arg4: memref<16x128xf32, #tpu.memory_space<vmem>>) attributes {dimension_semantics = [#tpu.dimension_semantics<parallel>], iteration_bounds = array<i64: 1>, scalar_prefetch = 0 : i64, scratch_operands = 0 : i64, tpu.core_type = #tpu.core_type<tc>, window_params = [{transform_indices = @transform_0, window_bounds = array<i64: 16, 128>}, {pipeline_mode = #tpu.pipeline_mode<synchronous>, transform_indices = @transform_1, window_bounds = array<i64: 128, 128>}, {pipeline_mode = #tpu.pipeline_mode<synchronous>, transform_indices = @transform_2, window_bounds = array<i64: 3, 128>}, {transform_indices = @transform_3, window_bounds = array<i64: 16, 128>}]} {
    %c0 = arith.constant 0 : index
    %c0_0 = arith.constant 0 : index
    %0 = vector.load %arg1[%c0, %c0_0] : memref<16x128xf32, #tpu.memory_space<vmem>>, vector<16x128xf32>
    %c0_1 = arith.constant 0 : index
    %c0_2 = arith.constant 0 : index
    %1 = vector.load %arg2[%c0_1, %c0_2] : memref<128x128xf32, #tpu.memory_space<vmem>>, vector<128x128xf32>
    %c0_3 = arith.constant 0 : index
    %c0_4 = arith.constant 0 : index
    %2 = vector.load %arg3[%c0_3, %c0_4] : memref<3x128xf32, #tpu.memory_space<vmem>>, vector<3x128xf32>
    %3 = vector.extract_strided_slice %2 {offsets = [0, 0], sizes = [1, 128], strides = [1, 1]} : vector<3x128xf32> to vector<1x128xf32>
    %4 = vector.extract_strided_slice %2 {offsets = [1, 0], sizes = [1, 128], strides = [1, 1]} : vector<3x128xf32> to vector<1x128xf32>
    %5 = vector.extract_strided_slice %2 {offsets = [2, 0], sizes = [1, 128], strides = [1, 1]} : vector<3x128xf32> to vector<1x128xf32>
    %cst = arith.constant dense<0.000000e+00> : vector<16x128xf32>
    %6 = tpu.matmul %0, %1, %cst {dimension_numbers = #tpu.dot_dimension_numbers<[1], [0], [0], [1], [0, 0, 1, 1], [], []>, precision = #tpu.contract_precision<fp32>} : vector<16x128xf32>, vector<128x128xf32>, vector<16x128xf32> -> vector<16x128xf32>
    %7 = vector.broadcast %3 : vector<1x128xf32> to vector<16x128xf32>
    %8 = arith.addf %6, %7 : vector<16x128xf32>
    %cst_5 = arith.constant 5.000000e-01 : f32
    %9 = vector.broadcast %cst_5 : f32 to vector<16x128xf32>
    %10 = arith.mulf %9, %8 : vector<16x128xf32>
    %cst_6 = arith.constant 0.707106769 : f32
    %11 = vector.broadcast %cst_6 : f32 to vector<16x128xf32>
    %12 = arith.mulf %8, %11 : vector<16x128xf32>
    %13 = math.erf %12 : vector<16x128xf32>
    %cst_7 = arith.constant 1.000000e+00 : f32
    %14 = vector.broadcast %cst_7 : f32 to vector<16x128xf32>
    %15 = arith.addf %14, %13 : vector<16x128xf32>
    %16 = arith.mulf %10, %15 : vector<16x128xf32>
    %cst_8 = arith.constant dense<0.000000e+00> : vector<16xf32>
    %17 = vector.multi_reduction <add>, %16, %cst_8 [1] : vector<16x128xf32> to vector<16xf32>
    %18 = vector.shape_cast %17 : vector<16xf32> to vector<16x1xf32>
    %cst_9 = arith.constant 7.812500e-03 : f32
    %19 = vector.broadcast %cst_9 : f32 to vector<16x1xf32>
    %20 = arith.mulf %18, %19 : vector<16x1xf32>
    %21 = arith.mulf %16, %16 : vector<16x128xf32>
    %cst_10 = arith.constant dense<0.000000e+00> : vector<16xf32>
    %22 = vector.multi_reduction <add>, %21, %cst_10 [1] : vector<16x128xf32> to vector<16xf32>
    %23 = vector.shape_cast %22 : vector<16xf32> to vector<16x1xf32>
    %cst_11 = arith.constant 7.812500e-03 : f32
    %24 = vector.broadcast %cst_11 : f32 to vector<16x1xf32>
    %25 = arith.mulf %23, %24 : vector<16x1xf32>
    %26 = arith.mulf %20, %20 : vector<16x1xf32>
    %27 = arith.subf %25, %26 : vector<16x1xf32>
    %cst_12 = arith.constant 0.000000e+00 : f32
    %28 = vector.broadcast %cst_12 : f32 to vector<16x1xf32>
    %29 = arith.maximumf %27, %28 : vector<16x1xf32>
    %30 = vector.broadcast %20 : vector<16x1xf32> to vector<16x128xf32>
    %31 = arith.subf %16, %30 : vector<16x128xf32>
    %cst_13 = arith.constant 9.99999974E-6 : f32
    %32 = vector.broadcast %cst_13 : f32 to vector<16x1xf32>
    %33 = arith.addf %29, %32 : vector<16x1xf32>
    %34 = math.rsqrt %33 : vector<16x1xf32>
    %35 = vector.broadcast %34 : vector<16x1xf32> to vector<16x128xf32>
    %36 = arith.mulf %31, %35 : vector<16x128xf32>
    %37 = vector.broadcast %4 : vector<1x128xf32> to vector<16x128xf32>
    %38 = arith.mulf %36, %37 : vector<16x128xf32>
    %39 = vector.broadcast %5 : vector<1x128xf32> to vector<16x128xf32>
    %40 = arith.addf %38, %39 : vector<16x128xf32>
    %c0_14 = arith.constant 0 : index
    %c0_15 = arith.constant 0 : index
    %41 = vector.load %arg4[%c0_14, %c0_15] : memref<16x128xf32, #tpu.memory_space<vmem>>, vector<16x128xf32>
    tpu.vector_store %arg4[%c0_14, %c0_15], %40 {strides = array<i32>} : memref<16x128xf32, #tpu.memory_space<vmem>>, vector<16x128xf32>,
    return
  }
  func.func @transform_0(%arg0: i32) -> (i32, i32) {
    %c0_i32 = arith.constant 0 : i32
    %c0_i32_0 = arith.constant 0 : i32
    return %arg0, %c0_i32 : i32, i32
  }
  func.func @transform_1(%arg0: i32) -> (i32, i32) {
    %c0_i32 = arith.constant 0 : i32
    %c0_i32_0 = arith.constant 0 : i32
    %c0_i32_1 = arith.constant 0 : i32
    return %c0_i32, %c0_i32_0 : i32, i32
  }
  func.func @transform_2(%arg0: i32) -> (i32, i32) {
    %c0_i32 = arith.constant 0 : i32
    %c0_i32_0 = arith.constant 0 : i32
    %c0_i32_1 = arith.constant 0 : i32
    return %c0_i32, %c0_i32_0 : i32, i32
  }
  func.func @transform_3(%arg0: i32) -> (i32, i32) {
    %c0_i32 = arith.constant 0 : i32
    %c0_i32_0 = arith.constant 0 : i32
    return %arg0, %c0_i32 : i32, i32
  }
}

</mosaic_0001>

<bundles_post_ra>
// kernel: tpu_custom_call.1
= control target key start
LH: loop header
LB: loop body
LE: loop exit
PB: predicated region body
PF: predicated region fallthrough
CT: control target
= control target key end

     0   :  { %8 = vsyncpa [#allocation3], 0  ;;  %s1038_s0 = inlined_call_operand.hbm [shape: f32[16,128], index: 0, kind: input, shape index: {}]   ;;  %s1039_s1 = inlined_call_operand.hbm [shape: f32[128,128], index: 1, kind: input, shape index: {}]   ;;  %s1040_s2 = inlined_call_operand.hbm [shape: f32[3,128], index: 2, kind: input, shape index: {}]   ;;  %s1041_s3 = inlined_call_operand.hbm [shape: f32[16,128], index: 3, kind: output, shape index: {}]  }
   0x1   :  { %9 = vsyncpa [#allocation6], 0 }
   0x2   :  { %10 = vsyncpa [#allocation4], 0  ;;  %s28_s14 = sshll.u32 %s1039_s1, 4  ;;  %s764_s15 = smov [#allocation5]   ;;  %s29_s14 = int_to_ptr.hbm [resolvable:$true] %s28_s14 }
   0x3   :  { %s30_s16 = sshll.u32 %s764_s15, 4  ;;  %s15_s19 = sshll.u32 %s1038_s0, 4  ;;  %s31_s16 = int_to_ptr.vmem [resolvable:$true] %s30_s16  ;;  %s16_s19 = int_to_ptr.hbm [resolvable:$true] %s15_s19 }
   0x4   :  { %s765_s20 = smov 128   ;;  %s766_s21 = smov 8  }
   0x5   :  { %36 = dma.hbm_to_vmem [thread:$0]  %s29_s14, 2048, %s31_s16, [#allocation6], %s765_s20, %s765_s20, %s766_s21  }
   0x6   :  { %s767_s22 = smov [#allocation2]   ;;  %s42_s1 = sshll.u32 %s1040_s2, 4  ;;  %s43_s1 = int_to_ptr.hbm [resolvable:$true] %s42_s1 }
   0x7   :  { %s17_s23 = sshll.u32 %s767_s22, 4  ;;  %s768_s0 = smov [#allocation7]   ;;  %s18_s23 = int_to_ptr.vmem [resolvable:$true] %s17_s23 }
   0x8   :  { %23 = dma.hbm_to_vmem [thread:$0]  %s16_s19, 256, %s18_s23, [#allocation3], %s765_s20, %s765_s20, %s766_s21  }
   0x9   :  { %s44_s26 = sshll.u32 %s768_s0, 4  ;;  %s45_s26 = int_to_ptr.vmem [resolvable:$true] %s44_s26 }
   0xa   :  { %47 = dma.hbm_to_vmem [thread:$0]  %s43_s1, 64, %s45_s26, [#allocation6]  }
   0xb   :  { %758 = dma.done.wait [#allocation3], 256  }
   0xc   :  { %759 = vsyncadd [#allocation3], 4294967040 }
   0xd   :  { %760 = dma.done.wait [#allocation6], 2112  }
   0xe   :  { %761 = vsyncadd [#allocation6], 4294965184  ;;  %v77_v0 = vld [vmem:[#allocation5 + $0x78] sm:$0xff]  ;;  %v76_v1 = vld [vmem:[#allocation5 + $0x70] sm:$0xff]  ;;  %s769_s2 = smov [#allocation8]   ;;  %s600_s30 = sshll.u32 %s1041_s3, 4  ;;  %s601_s30 = int_to_ptr.hbm [resolvable:$true] %s600_s30 }
   0xf   :  { %v75_v2 = vld [vmem:[#allocation5 + $0x68] sm:$0xff]  ;;  %v805_v3 = vand.u32 4294901760, %v77_v0  ;;  %v807_v4 = vand.u32 4294901760, %v76_v1  ;;  %v74_v6 = vld [vmem:[#allocation5 + $0x60] sm:$0xff]  ;;  %v73_v7 = vld [vmem:[#allocation5 + $0x58] sm:$0xff]  ;;  %s598_s27 = sshll.u32 %s769_s2, 4  ;;  %s599_s27 = int_to_ptr.vmem [resolvable:$true] %s598_s27 }
  0x10   :  { %v809_v5 = vand.u32 4294901760, %v75_v2  ;;  %v72_v8 = vld [vmem:[#allocation5 + $0x50] sm:$0xff]  ;;  %v811_v9 = vand.u32 4294901760, %v74_v6  ;;  %v813_v10 = vand.u32 4294901760, %v73_v7  ;;  %v71_v12 = vld [vmem:[#allocation5 + $0x48] sm:$0xff]  ;;  %v70_v13 = vld [vmem:[#allocation5 + $0x40] sm:$0xff] }
  0x11   :  { %v815_v11 = vand.u32 4294901760, %v72_v8  ;;  %81 = vmatpush.msra.mxu0 %v805_v3  ;;  %v130_v14 = vsub.f32 %v77_v0, %v805_v3  ;;  %v136_v15 = vsub.f32 %v76_v1, %v807_v4  ;;  %294 = vmatpush.msra.mxu3 %v805_v3  ;;  %v822_v17 = vand.u32 4294901760, %v71_v12  ;;  %v69_v18 = vld [vmem:[#allocation5 + $0x38] sm:$0xff]  ;;  %v68_v26 = vld [vmem:[#allocation5 + $0x30] sm:$0xff]  ;;  %v67_v36 = vld [vmem:[#allocation5 + $0x28] sm:$0xff] }
  0x12   :  { %v142_v16 = vsub.f32 %v75_v2, %v809_v5  ;;  %v148_v19 = vsub.f32 %v74_v6, %v811_v9  ;;  %v154_v20 = vsub.f32 %v73_v7, %v813_v10  ;;  %v826_v21 = vand.u32 4294901760, %v70_v13  ;;  %v66_v42 = vld [vmem:[#allocation5 + $0x20] sm:$0xff]  ;;  %v65_v48 = vld [vmem:[#allocation5 + $0x18] sm:$0xff]  ;;  %v64_v54 = vld [vmem:[#allocation5 + $0x10] sm:$0xff] }
  0x13   :  { %83 = vmatpush.msra.mxu0 %v807_v4  ;;  %236 = vmatpush.msra.mxu2 %v130_v14  ;;  %v829_v22 = vand.u32 4294901760, %v130_v14  ;;  %v831_v23 = vand.u32 4294901760, %v136_v15  ;;  %v160_v25 = vsub.f32 %v72_v8, %v815_v11  ;;  %v166_v28 = vsub.f32 %v71_v12, %v822_v17  ;;  %v63_v60 = vld [vmem:[#allocation5 + $0x8] sm:$0xff]  ;;  %v62_v2 = vld [vmem:[#allocation5] sm:$0xff] }
  0x14   :  { %v833_v24 = vand.u32 4294901760, %v142_v16  ;;  %296 = vmatpush.msra.mxu3 %v807_v4  ;;  %v837_v27 = vand.u32 4294901760, %v148_v19  ;;  %v840_v29 = vand.u32 4294901760, %v69_v18  ;;  %v846_v33 = vand.u32 4294901760, %v154_v20 }
  0x15   :  { %85 = vmatpush.msra.mxu0 %v809_v5  ;;  %239 = vmatpush.msra.mxu2 %v136_v15  ;;  %v132_v30 = vsub.f32 %v130_v14, %v829_v22  ;;  %v138_v31 = vsub.f32 %v136_v15, %v831_v23  ;;  %v172_v34 = vsub.f32 %v70_v13, %v826_v21  ;;  %v850_v35 = vand.u32 4294901760, %v68_v26 }
  0x16   :  { %v144_v32 = vsub.f32 %v142_v16, %v833_v24  ;;  %298 = vmatpush.msra.mxu3 %v809_v5  ;;  %v150_v39 = vsub.f32 %v148_v19, %v837_v27  ;;  %v854_v40 = vand.u32 4294901760, %v160_v25  ;;  %v857_v41 = vand.u32 4294901760, %v166_v28 }
  0x17   :  { %87 = vmatpush.msra.mxu0 %v811_v9  ;;  %242 = vmatpush.msra.mxu2 %v142_v16  ;;  %v133_v37 = vand.u32 4294901760, %v132_v30  ;;  %v139_v38 = vand.u32 4294901760, %v138_v31  ;;  %v156_v44 = vsub.f32 %v154_v20, %v846_v33  ;;  %v178_v45 = vsub.f32 %v69_v18, %v840_v29 }
  0x18   :  { %300 = vmatpush.msra.mxu3 %v811_v9  ;;  %v145_v43 = vand.u32 4294901760, %v144_v32  ;;  %v862_v46 = vand.u32 4294901760, %v67_v36  ;;  %v865_v47 = vand.u32 4294901760, %v172_v34  ;;  %v151_v49 = vand.u32 4294901760, %v150_v39 }
  0x19   :  { %89 = vmatpush.msra.mxu0 %v813_v10  ;;  %134 = vmatpush.msra.mxu1 %v133_v37  ;;  %v162_v50 = vsub.f32 %v160_v25, %v854_v40  ;;  %v184_v51 = vsub.f32 %v68_v26, %v850_v35  ;;  %v870_v52 = vand.u32 4294901760, %v66_v42  ;;  %v168_v53 = vsub.f32 %v166_v28, %v857_v41 }
  0x1a   :  { %245 = vmatpush.msra.mxu2 %v148_v19  ;;  %302 = vmatpush.msra.mxu3 %v813_v10  ;;  %v157_v55 = vand.u32 4294901760, %v156_v44  ;;  %v190_v56 = vsub.f32 %v67_v36, %v862_v46  ;;  %v876_v57 = vand.u32 4294901760, %v65_v48  ;;  %v878_v58 = vand.u32 4294901760, %v178_v45 }
  0x1b   :  { %91 = vmatpush.msra.mxu0 %v815_v11  ;;  %140 = vmatpush.msra.mxu1 %v139_v38  ;;  %v174_v59 = vsub.f32 %v172_v34, %v865_v47  ;;  %v163_v61 = vand.u32 4294901760, %v162_v50  ;;  %v196_v62 = vsub.f32 %v66_v42, %v870_v52  ;;  %v884_v63 = vand.u32 4294901760, %v64_v54  ;;  %v60_v38 = vld [vmem:[#allocation2] sm:$0xff] }
  0x1c   :  { %248 = vmatpush.msra.mxu2 %v154_v20  ;;  %304 = vmatpush.msra.mxu3 %v815_v11  ;;  %v886_v0 = vand.u32 4294901760, %v184_v51  ;;  %v169_v1 = vand.u32 4294901760, %v168_v53  ;;  %v180_v6 = vsub.f32 %v178_v45, %v878_v58  ;;  %v202_v7 = vsub.f32 %v65_v48, %v876_v57 }
  0x1d   :  { %93 = vmatpush.msra.mxu0 %v822_v17  ;;  %146 = vmatpush.msra.mxu1 %v145_v43  ;;  %v892_v8 = vand.u32 4294901760, %v63_v60  ;;  %v894_v12 = vand.u32 4294901760, %v190_v56  ;;  %v175_v13 = vand.u32 4294901760, %v174_v59  ;;  %v208_v15 = vsub.f32 %v64_v54, %v884_v63  ;;  %v61_v54 = vld [vmem:[#allocation2 + $0x8] sm:$0xff] }
  0x1e   :  { %251 = vmatpush.msra.mxu2 %v160_v25  ;;  %306 = vmatpush.msra.mxu3 %v822_v17  ;;  %v186_v14 = vsub.f32 %v184_v51, %v886_v0  ;;  %v900_v16 = vand.u32 4294901760, %v62_v2  ;;  %v902_v18 = vand.u32 4294901760, %v196_v62  ;;  %v181_v19 = vand.u32 4294901760, %v180_v6 }
  0x1f   :  { %95 = vmatpush.msra.mxu0 %v826_v21  ;;  %152 = vmatpush.msra.mxu1 %v151_v49  ;;  %v192_v20 = vsub.f32 %v190_v56, %v894_v12  ;;  %v214_v25 = vsub.f32 %v63_v60, %v892_v8  ;;  %v908_v26 = vand.u32 4294901760, %v202_v7  ;;  %v914_v32 = vand.u32 4294901760, %v208_v15 }
  0x20   :  { %254 = vmatpush.msra.mxu2 %v166_v28  ;;  %308 = vmatpush.msra.mxu3 %v826_v21  ;;  %v187_v28 = vand.u32 4294901760, %v186_v14  ;;  %v198_v30 = vsub.f32 %v196_v62, %v902_v18  ;;  %v220_v31 = vsub.f32 %v62_v2, %v900_v16  ;;  %v927_v44 = vand.u32 4294901760, %v60_v38 }
  0x21   :  { %97 = vmatpush.msra.mxu0 %v840_v29  ;;  %158 = vmatpush.msra.mxu1 %v157_v55  ;;  %v204_v36 = vsub.f32 %v202_v7, %v908_v26  ;;  %v919_v37 = vand.u32 4294901760, %v214_v25  ;;  %v210_v42 = vsub.f32 %v208_v15, %v914_v32  ;;  %v942_v59 = vand.u32 4294901760, %v61_v54 }
  0x22   :  { %257 = vmatpush.msra.mxu2 %v172_v34  ;;  %310 = vmatpush.msra.mxu3 %v840_v29  ;;  %v193_v34 = vand.u32 4294901760, %v192_v20  ;;  %v199_v39 = vand.u32 4294901760, %v198_v30  ;;  %v924_v43 = vand.u32 4294901760, %v220_v31 }
  0x23   :  { %99 = vmatpush.msra.mxu0 %v850_v35  ;;  %164 = vmatpush.msra.mxu1 %v163_v61  ;;  %v216_v48 = vsub.f32 %v214_v25, %v919_v37  ;;  %v211_v49 = vand.u32 4294901760, %v210_v42 }
  0x24   :  { %260 = vmatpush.msra.mxu2 %v178_v45  ;;  %312 = vmatpush.msra.mxu3 %v850_v35  ;;  %v205_v45 = vand.u32 4294901760, %v204_v36  ;;  %v222_v50 = vsub.f32 %v220_v31, %v924_v43 }
  0x25   :  { %101 = vmatpush.msra.mxu0 %v862_v46  ;;  %170 = vmatpush.msra.mxu1 %v169_v1  ;;  %v217_v53 = vand.u32 4294901760, %v216_v48 }
  0x26   :  { %263 = vmatpush.msra.mxu2 %v184_v51  ;;  %314 = vmatpush.msra.mxu3 %v862_v46  ;;  %v113_v51 = vsub.f32 %v60_v38, %v927_v44  ;;  %v223_v55 = vand.u32 4294901760, %v222_v50 }
  0x27   :  { %103 = vmatpush.msra.mxu0 %v870_v52  ;;  %176 = vmatpush.msra.mxu1 %v175_v13 }
  0x28   :  { %266 = vmatpush.msra.mxu2 %v190_v56  ;;  %316 = vmatpush.msra.mxu3 %v870_v52  ;;  %v114_v56 = vand.u32 4294901760, %v113_v51 }
  0x29   :  { %105 = vmatpush.msra.mxu0 %v876_v57  ;;  %182 = vmatpush.msra.mxu1 %v181_v19 }
  0x2a   :  { %269 = vmatpush.msra.mxu2 %v196_v62  ;;  %318 = vmatpush.msra.mxu3 %v876_v57 }
  0x2b   :  { %107 = vmatpush.msra.mxu0 %v884_v63  ;;  %188 = vmatpush.msra.mxu1 %v187_v28 }
  0x2c   :  { %272 = vmatpush.msra.mxu2 %v202_v7  ;;  %320 = vmatpush.msra.mxu3 %v884_v63 }
  0x2d   :  { %109 = vmatpush.msra.mxu0 %v892_v8  ;;  %194 = vmatpush.msra.mxu1 %v193_v34 }
  0x2e   :  { %275 = vmatpush.msra.mxu2 %v208_v15  ;;  %322 = vmatpush.msra.mxu3 %v892_v8 }
  0x2f   :  { %111 = vmatpush.msra.mxu0 %v900_v16  ;;  %200 = vmatpush.msra.mxu1 %v199_v39 }
  0x30   :  { %278 = vmatpush.msra.mxu2 %v214_v25  ;;  %324 = vmatpush.msra.mxu3 %v900_v16 }
  0x31   :  { %341 = vmatpush.msrb.mxu0 %v829_v22  ;;  %206 = vmatpush.msra.mxu1 %v205_v45 }
  0x32   :  { %281 = vmatpush.msra.mxu2 %v220_v31  ;;  %632 = vmatpush.msrb.mxu3 %v805_v3 }
  0x33   :  { %345 = vmatpush.msrb.mxu0 %v831_v23  ;;  %212 = vmatpush.msra.mxu1 %v211_v49 }
  0x34   :  { %616 = vmatpush.msrb.mxu2 %v829_v22  ;;  %633 = vmatpush.msrb.mxu3 %v807_v4  ;;  %v115_v22 = vsub.f32 %v113_v51, %v114_v56 }
  0x35   :  { %349 = vmatpush.msrb.mxu0 %v833_v24  ;;  %218 = vmatpush.msra.mxu1 %v217_v53 }
  0x36   :  { %617 = vmatpush.msrb.mxu2 %v831_v23  ;;  %634 = vmatpush.msrb.mxu3 %v809_v5  ;;  %v121_v23 = vsub.f32 %v61_v54, %v942_v59 }
  0x37   :  { %353 = vmatpush.msrb.mxu0 %v837_v27  ;;  %224 = vmatpush.msra.mxu1 %v223_v55 }
  0x38   :  { %618 = vmatpush.msrb.mxu2 %v833_v24  ;;  %635 = vmatpush.msrb.mxu3 %v811_v9  ;;  %v122_v24 = vand.u32 4294901760, %v121_v23 }
  0x39   :  { %357 = vmatpush.msrb.mxu0 %v846_v33  ;;  %412 = vmatpush.msrb.mxu1 %v805_v3  ;;  %v116_v3 = vand.u32 4294901760, %v115_v22 }
  0x3a   :  { %619 = vmatpush.msrb.mxu2 %v837_v27  ;;  %636 = vmatpush.msrb.mxu3 %v813_v10 }
  0x3b   :  { %361 = vmatpush.msrb.mxu0 %v854_v40  ;;  %414 = vmatpush.msrb.mxu1 %v807_v4  ;;  %v123_v4 = vsub.f32 %v121_v23, %v122_v24 }
  0x3c   :  { %620 = vmatpush.msrb.mxu2 %v846_v33  ;;  %637 = vmatpush.msrb.mxu3 %v815_v11 }
  0x3d   :  { %365 = vmatpush.msrb.mxu0 %v857_v41  ;;  %416 = vmatpush.msrb.mxu1 %v809_v5  ;;  %v124_v5 = vand.u32 4294901760, %v123_v4 }
  0x3e   :  { %621 = vmatpush.msrb.mxu2 %v854_v40  ;;  %117 = vmatmul.f32.vlgmr.msra.gmra.mxu0 %v116_v3 }
  0x3f   :  { %369 = vmatpush.msrb.mxu0 %v865_v47  ;;  %418 = vmatpush.msrb.mxu1 %v811_v9 }
  0x40   :  { %622 = vmatpush.msrb.mxu2 %v857_v41  ;;  %638 = vmatpush.msrb.mxu3 %v822_v17 }
  0x41   :  { %420 = vmatpush.msrb.mxu1 %v813_v10  ;;  %373 = vmatpush.msrb.mxu0 %v878_v58  ;;  %v1009_v10 = vld [vmem:[#allocation7] sm:$0x7] }
  0x42   :  { %623 = vmatpush.msrb.mxu2 %v865_v47  ;;  %639 = vmatpush.msrb.mxu3 %v826_v21 }
  0x43   :  { %284 = vmatmul.f32.vlgmr.msra.gmra.mxu2 %v113_v51  ;;  %377 = vmatpush.msrb.mxu0 %v886_v0 }
  0x44   :  { %624 = vmatpush.msrb.mxu2 %v878_v58  ;;  %422 = vmatpush.msrb.mxu1 %v815_v11 }
  0x45   :  { %328 = vmatmul.f32.vlgmr.msra.gmra.mxu3 %v114_v56  ;;  %381 = vmatpush.msrb.mxu0 %v894_v12 }
  0x46   :  { %625 = vmatpush.msrb.mxu2 %v886_v0  ;;  %424 = vmatpush.msrb.mxu1 %v822_v17  ;;  %v79_v17 = vperm.slane %v1009_v10, 0 }
  0x47   :  { %640 = vmatpush.msrb.mxu3 %v840_v29  ;;  %385 = vmatpush.msrb.mxu0 %v902_v18 }
  0x48   :  { %626 = vmatpush.msrb.mxu2 %v894_v12  ;;  %426 = vmatpush.msrb.mxu1 %v826_v21 }
  0x49   :  { %641 = vmatpush.msrb.mxu3 %v850_v35  ;;  %125 = vmatmul.f32.gmra.mxu0 %v124_v5 }
  0x4a   :  { %226 = vmatmul.f32.vlgmr.msra.gmra.mxu1 %v927_v44  ;;  %627 = vmatpush.msrb.mxu2 %v902_v18 }
  0x4b   :  { %389 = vmatpush.msrb.mxu0 %v908_v26  ;;  %428 = vmatpush.msrb.mxu1 %v840_v29 }
  0x4c   :  { %642 = vmatpush.msrb.mxu3 %v862_v46  ;;  %289 = vmatmul.f32.gmra.mxu2 %v121_v23 }
  0x4d   :  { %628 = vmatpush.msrb.mxu2 %v908_v26  ;;  %393 = vmatpush.msrb.mxu0 %v914_v32 }
  0x4e   :  { %430 = vmatpush.msrb.mxu1 %v850_v35  ;;  %643 = vmatpush.msrb.mxu3 %v870_v52 }
  0x4f   :  { %334 = vmatmul.f32.gmra.mxu3 %v122_v24  ;;  %629 = vmatpush.msrb.mxu2 %v914_v32 }
  0x50   :  { %397 = vmatpush.msrb.mxu0 %v919_v37  ;;  %432 = vmatpush.msrb.mxu1 %v862_v46 }
  0x51   :  { %644 = vmatpush.msrb.mxu3 %v876_v57  ;;  %630 = vmatpush.msrb.mxu2 %v919_v37 }
  0x52   :  { %401 = vmatpush.msrb.mxu0 %v924_v43  ;;  %434 = vmatpush.msrb.mxu1 %v870_v52 }
  0x53   :  { %645 = vmatpush.msrb.mxu3 %v884_v63  ;;  %230 = vmatmul.f32.gmra.mxu1 %v942_v59 }
  0x54   :  { %403 = vmatmul.f32.vlgmr.msrb.gmra.mxu0 %v927_v44  ;;  %631 = vmatpush.msrb.mxu2 %v924_v43 }
  0x55   :  { %436 = vmatpush.msrb.mxu1 %v876_v57  ;;  %646 = vmatpush.msrb.mxu3 %v892_v8 }
  0x56   :  { %407 = vmatmul.f32.vlgmr.msrb.gmra.mxu2 %v942_v59 }
  0x57   :  { %438 = vmatpush.msrb.mxu1 %v884_v63  ;;  %647 = vmatpush.msrb.mxu3 %v900_v16 }
  0x58   :  { %448 = vmatmul.f32.vlgmr.msrb.gmra.mxu3 %v942_v59 }
  0x59   :  { %440 = vmatpush.msrb.mxu1 %v892_v8 }
  0x5b   :  { %442 = vmatpush.msrb.mxu1 %v900_v16 }
  0x5c   :  { %444 = vmatmul.f32.vlgmr.msrb.gmra.mxu1 %v927_v44 }
  0xbb   :  { %v118_v9 = vpop.f32.mrf.mxu0 }
  0xbc   :  { %v119_v29 = vadd.f32 %v118_v9, %v79_v17 }
  0xc6   :  { %v285_v11 = vpop.f32.mrf.mxu2  ;;  %v126_v33 = vpop.f32.mrf.mxu0 }
  0xc7   :  { %v227_v21 = vpop.f32.mrf.mxu1  ;;  %v127_v35 = vadd.f32 %v126_v33, %v79_v17 }
  0xc8   :  { %v329_v27 = vpop.f32.mrf.mxu3  ;;  %v228_v40 = vadd.f32 %v227_v21, %v119_v29 }
  0xca   :  { %v286_v52 = vadd.f32 %v285_v11, %v228_v40 }
  0xcc   :  { %v330_v61 = vadd.f32 %v329_v27, %v286_v52 }
  0xcf   :  { %v290_v41 = vpop.f32.mrf.mxu2 }
  0xd0   :  { %v231_v46 = vpop.f32.mrf.mxu1 }
  0xd1   :  { %v232_v47 = vadd.f32 %v231_v46, %v127_v35  ;;  %v404_v60 = vpop.f32.mrf.mxu0 }
  0xd2   :  { %v335_v57 = vpop.f32.mrf.mxu3  ;;  %v405_v62 = vadd.f32 %v404_v60, %v330_v61 }
  0xd3   :  { %v291_v58 = vadd.f32 %v290_v41, %v232_v47 }
  0xd5   :  { %v336_v63 = vadd.f32 %v335_v57, %v291_v58 }
  0xd9   :  { %v408_v0 = vpop.f32.mrf.mxu2  ;;  %v445_v1 = vpop.f32.mrf.mxu1 }
  0xda   :  { %v409_v2 = vadd.f32 %v408_v0, %v336_v63  ;;  %v1012_v6 = vadd.f32 %v445_v1, %v405_v62 }
  0xdb   :  { %v449_v7 = vpop.f32.mrf.mxu3 }
  0xdc   :  { %v1015_v8 = vmul.f32 0.70710677, %v1012_v6  ;;  %v1017_v12 = vadd.f32 %v449_v7, %v409_v2 }
  0xde   :  { %v456_v13 = vmul.f32 %v1015_v8, %v1015_v8  ;;  %v1022_v14 = vmul.f32 0.70710677, %v1017_v12 }
  0xe0   :  { %v457_v15 = vmin.f32 %v456_v13, 16.0  ;;  %v496_v16 = vmul.f32 %v1022_v14, %v1022_v14 }
  0xe2   :  { %v458_v18 = vmul.f32 2.1237322e-06, %v457_v15  ;;  %v469_v19 = vmul.f32 3.8918573e-05, %v457_v15  ;;  %v497_v20 = vmin.f32 %v496_v16, 16.0 }
  0xe4   :  { %v459_v25 = vadd.f32 0.00028619796, %v458_v18  ;;  %v470_v26 = vadd.f32 0.001143296, %v469_v19  ;;  %v498_v28 = vmul.f32 2.1237322e-06, %v497_v20 }
  0xe5   :  { %v509_v30 = vmul.f32 3.8918573e-05, %v497_v20 }
  0xe6   :  { %v460_v31 = vmul.f32 %v459_v25, %v457_v15  ;;  %v471_v32 = vmul.f32 %v470_v26, %v457_v15  ;;  %v499_v34 = vadd.f32 0.00028619796, %v498_v28 }
  0xe7   :  { %v510_v36 = vadd.f32 0.001143296, %v509_v30 }
  0xe8   :  { %v472_v37 = vadd.f32 0.014752088, %v471_v32  ;;  %v500_v38 = vmul.f32 %v499_v34, %v497_v20  ;;  %v461_v39 = vadd.f32 0.0036580483, %v460_v31  ;;  %v452_v31 = vmul.f32 0.5, %v1012_v6 }
  0xe9   :  { %v511_v42 = vmul.f32 %v510_v36, %v497_v20 }
  0xea   :  { %v473_v43 = vmul.f32 %v472_v37, %v457_v15  ;;  %v501_v44 = vadd.f32 0.0036580483, %v500_v38  ;;  %v462_v49 = vmul.f32 %v461_v39, %v457_v15  ;;  %v453_v38 = vmul.f32 0.5, %v1017_v12 }
  0xeb   :  { %v512_v45 = vadd.f32 0.014752088, %v511_v42 }
  0xec   :  { %v474_v48 = vadd.f32 0.112945676, %v473_v43  ;;  %v502_v53 = vmul.f32 %v501_v44, %v497_v20  ;;  %v463_v56 = vadd.f32 0.05243302, %v462_v49 }
  0xed   :  { %v513_v50 = vmul.f32 %v512_v45, %v497_v20 }
  0xee   :  { %v475_v51 = vmul.f32 %v474_v48, %v457_v15  ;;  %v503_v23 = vadd.f32 0.05243302, %v502_v53  ;;  %v464_v4 = vmul.f32 %v463_v56, %v457_v15 }
  0xef   :  { %v514_v54 = vadd.f32 0.112945676, %v513_v50 }
  0xf0   :  { %v476_v55 = vadd.f32 0.4994258, %v475_v51  ;;  %v504_v9 = vmul.f32 %v503_v23, %v497_v20  ;;  %v465_v17 = vadd.f32 0.18741608, %v464_v4 }
  0xf1   :  { %v515_v59 = vmul.f32 %v514_v54, %v497_v20 }
  0xf2   :  { %v477_v22 = vmul.f32 %v476_v55, %v457_v15  ;;  %v505_v21 = vadd.f32 0.18741608, %v504_v9  ;;  %v466_v29 = vmul.f32 %v465_v17, %v457_v15  ;;  %v586_v17 = vperm.slane %v1009_v10, 1 }
  0xf3   :  { %v516_v3 = vadd.f32 0.4994258, %v515_v59 }
  0xf4   :  { %v478_v24 = vadd.f32 1.0, %v477_v22  ;;  %v506_v41 = vmul.f32 %v505_v21, %v497_v20  ;;  %v467_v52 = vadd.f32 1.1283791, %v466_v29 }
  0xf5   :  { %v517_v5 = vmul.f32 %v516_v3, %v497_v20 }
  0xf6   :  { %654 = vrcp.f32 %v478_v24  ;;  %v490_v46 = vand.u32 2147483648, %v478_v24  ;;  %v488_v58 = vand.u32 2147483647, %v478_v24  ;;  %vm484_vm1 = vweird.f32 %v478_v24 }
  0xf7   :  { %v518_v11 = vadd.f32 1.0, %v517_v5  ;;  %v507_v62 = vadd.f32 1.1283791, %v506_v41  ;;  %v468_v7 = vmul.f32 %v467_v52, %v1015_v8 }
  0xf8   :  { %v491_v0 = vor.u32 1.1754944e-38, %v490_v46  ;;  %vm489_vm4 = vcmp.eq.f32.partialorder %v488_v58, 8.507059e+37 }
  0xf9   :  { %656 = vrcp.f32 %v518_v11  ;;  %v530_v63 = vand.u32 2147483648, %v518_v11  ;;  %v528_v2 = vand.u32 2147483647, %v518_v11  ;;  %vm524_vm5 = vweird.f32 %v518_v11 }
  0xfa   :  { %v508_v20 = vmul.f32 %v507_v62, %v1022_v14 }
  0xfb   :  { %v531_v19 = vor.u32 1.1754944e-38, %v530_v63  ;;  %vm529_vm7 = vcmp.eq.f32.partialorder %v528_v2, 8.507059e+37 }
  0xfc   :  { %v655_v27 = vpop.eup %654 }
  0xfd   :  { %v480_v33 = vmul.f32 %v655_v27, %v478_v24  ;;  %vm485_vm0 = vweird.f32 %v655_v27 }
  0xfe   :  { %vm486_vm2 = vmor %vm484_vm1, %vm485_vm0 }
  0xff   :  { %v657_v35 = vpop.eup %656  ;;  %v481_v40 = vsub.f32 1.0, %v480_v33  ;;  %v589_v33 = vperm.slane %v1009_v10, 2 }
 0x100   :  { %v520_v47 = vmul.f32 %v657_v35, %v518_v11  ;;  %vm525_vm3 = vweird.f32 %v657_v35 }
 0x101   :  { %v482_v57 = vmul.f32 %v655_v27, %v481_v40  ;;  %vm526_vm6 = vmor %vm524_vm5, %vm525_vm3 }
 0x102   :  { %v521_v60 = vsub.f32 1.0, %v520_v47 }
 0x103   :  { %v483_v61 = vadd.f32 %v655_v27, %v482_v57 }
 0x104   :  { %v522_v1 = vmul.f32 %v657_v35, %v521_v60 }
 0x105   :  { %v487_v13 = vsel %vm486_vm2, %v655_v27, %v483_v61 }
 0x106   :  { %v492_v15 = vsel %vm489_vm4, %v491_v0, %v487_v13  ;;  %v523_v16 = vadd.f32 %v657_v35, %v522_v1 }
 0x107   :  { %v493_v18 = vmul.f32 %v492_v15, %v468_v7 }
 0x108   :  { %v527_v25 = vsel %vm526_vm6, %v657_v35, %v523_v16 }
 0x109   :  { %v532_v26 = vsel %vm529_vm7, %v531_v19, %v527_v25  ;;  %v614_v28 = vclamps-f32 %v493_v18, 1.0 }
 0x10a   :  { %v533_v30 = vmul.f32 %v532_v26, %v508_v20 }
 0x10b   :  { %v536_v32 = vadd.f32 1.0, %v614_v28 }
 0x10c   :  { %v615_v34 = vclamps-f32 %v533_v30, 1.0 }
 0x10d   :  { %v538_v8 = vmul.f32 %v536_v32, %v452_v31 }
 0x10e   :  { %v537_v37 = vadd.f32 1.0, %v615_v34 }
 0x10f   :  { %540 = vadd.xlane.f32.xlu0 %v538_v8  ;;  %v546_v36 = vmul.f32 %v538_v8, %v538_v8 }
 0x110   :  { %v539_v39 = vmul.f32 %v537_v37, %v453_v38 }
 0x111   :  { %548 = vadd.xlane.f32.xlu1 %v546_v36 }
 0x112   :  { %v547_v42 = vmul.f32 %v539_v39, %v539_v39 }
 0x117   :  { %542 = vadd.xlane.f32.xlu0 %v539_v39 }
 0x119   :  { %550 = vadd.xlane.f32.xlu1 %v547_v42 }
 0x182   :  { %v541_v14 = vpop.xlane.xlu0 %540 }
 0x183   :  { %v544_v43 = vmul.f32 0.0078125, %v541_v14 }
 0x184   :  { %v549_v44 = vpop.xlane.xlu1 %548 }
 0x185   :  { %v554_v45 = vmul.f32 %v544_v43, %v544_v43  ;;  %v552_v48 = vmul.f32 0.0078125, %v549_v44  ;;  %v560_v21 = vsub.f32 %v538_v8, %v544_v43 }
 0x187   :  { %v556_v49 = vsub.f32 %v552_v48, %v554_v45 }
 0x189   :  { %v558_v6 = vmax.f32 %v556_v49, 0.0 }
 0x18a   :  { %v543_v50 = vpop.xlane.xlu0 %542 }
 0x18b   :  { %v562_v51 = vadd.f32 1e-05, %v558_v6  ;;  %v545_v53 = vmul.f32 0.0078125, %v543_v50 }
 0x18c   :  { %v551_v54 = vpop.xlane.xlu1 %550 }
 0x18d   :  { %658 = vrsqrt.f32 %v562_v51  ;;  %v555_v55 = vmul.f32 %v545_v53, %v545_v53  ;;  %v553_v56 = vmul.f32 0.0078125, %v551_v54  ;;  %vm570_vm9 = vweird.f32 %v562_v51 }
 0x18e   :  { %v561_v58 = vsub.f32 %v539_v39, %v545_v53 }
 0x18f   :  { %v557_v12 = vsub.f32 %v553_v56, %v555_v55 }
 0x191   :  { %v559_v59 = vmax.f32 %v557_v12, 0.0 }
 0x193   :  { %v659_v22 = vpop.eup %658  ;;  %v563_v3 = vadd.f32 1e-05, %v559_v59 }
 0x194   :  { %v565_v23 = vmul.f32 %v659_v22, %v562_v51  ;;  %vm571_vm8 = vweird.f32 %v659_v22 }
 0x195   :  { %660 = vrsqrt.f32 %v563_v3  ;;  %vm572_vm10 = vmor %vm570_vm9, %vm571_vm8  ;;  %vm580_vm12 = vweird.f32 %v563_v3 }
 0x196   :  { %v566_v24 = vmul.f32 %v659_v22, %v565_v23 }
 0x198   :  { %v567_v4 = vmul.f32 0.5, %v566_v24 }
 0x19a   :  { %v568_v5 = vsub.f32 1.5, %v567_v4 }
 0x19b   :  { %v661_v9 = vpop.eup %660 }
 0x19c   :  { %v569_v11 = vmul.f32 %v659_v22, %v568_v5  ;;  %v575_v27 = vmul.f32 %v661_v9, %v563_v3  ;;  %vm581_vm11 = vweird.f32 %v661_v9 }
 0x19d   :  { %vm582_vm13 = vmor %vm580_vm12, %vm581_vm11 }
 0x19e   :  { %v573_v29 = vsel %vm572_vm10, %v659_v22, %v569_v11  ;;  %v576_v35 = vmul.f32 %v661_v9, %v575_v27 }
 0x19f   :  { %v584_v40 = vmul.f32 %v573_v29, %v560_v21 }
 0x1a0   :  { %v577_v41 = vmul.f32 0.5, %v576_v35 }
 0x1a1   :  { %v587_v46 = vmul.f32 %v586_v17, %v584_v40 }
 0x1a2   :  { %v578_v47 = vsub.f32 1.5, %v577_v41 }
 0x1a3   :  { %v590_v52 = vadd.f32 %v589_v33, %v587_v46 }
 0x1a4   :  { %v579_v57 = vmul.f32 %v661_v9, %v578_v47 }
 0x1a5   :  { %592 = vst [vmem:[#allocation8] sm:$0xff] %v590_v52 }
 0x1a6   :  { %v583_v60 = vsel %vm582_vm13, %v661_v9, %v579_v57 }
 0x1a7   :  { %v585_v61 = vmul.f32 %v583_v60, %v561_v58 }
 0x1a9   :  { %v588_v10 = vmul.f32 %v586_v17, %v585_v61 }
 0x1ab   :  { %v591_v62 = vadd.f32 %v589_v33, %v588_v10 }
 0x1ad   :  { %593 = vst [vmem:[#allocation8 + $0x8] sm:$0xff] %v591_v62 }
 0x1ae   :  { %606 = dma.vmem_to_hbm [thread:$0]  %s599_s27, 256, %s601_s30, [#allocation4], %s765_s20, %s765_s20, %s766_s21  }
 0x1af   :  { %762 = dma.done.wait [#allocation4], 256  }
 0x1b0   :  { %763 = vsyncadd [#allocation4], 4294967040 }
 0x1b1   :  { %611 = vsyncpa [#allocation3], 1 }
 0x1b2   :  { %612 = vsyncpa [#allocation6], 1 }
 0x1b3   :  { %613 = vsyncpa [#allocation4], 1 }

</bundles_post_ra>
